<compile_context>
chip_gen: v6e
topology: v6e:2x2x1
jax: 0.10.0
libtpu: 0.0.40
codegen_flags: <defaults>
</compile_context>

<pallas_src>
import functools

import jax
import jax.numpy as jnp
from jax.experimental import pallas as pl
from jax.experimental.pallas import tpu as pltpu


# ----------------------------------------------------------------------------
# Generic lane-dense matmul + bias kernel (gate precompute & vocab projection).
# bf16 operands into the MXU, f32 accumulation, tiled on (M, N).
# ----------------------------------------------------------------------------
def _matmul_bias_kernel(x_ref, w_ref, b_ref, out_ref):
    acc = jnp.dot(x_ref[...], w_ref[...], preferred_element_type=jnp.float32)
    out_ref[...] = (acc + b_ref[...]).astype(out_ref.dtype)


def _pick_tile(dim, candidates):
    for c in candidates:
        if dim % c == 0:
            return c
    return dim


def _matmul_bias(x, w, b, out_dtype=jnp.float32):
    """(M, K) @ (K, N) + (1, N) -> (M, N).

    N is zero-padded to a multiple of 128 so the output lane dim always tiles
    cleanly (pad sliced off before returning).  Operands are cast to bf16 for
    the MXU; accumulation stays f32.
    """
    M, K = x.shape
    N = w.shape[1]
    Np = ((N + 127) // 128) * 128
    if Np != N:
        w = jnp.pad(w, ((0, 0), (0, Np - N)))
        b = jnp.pad(b, ((0, 0), (0, Np - N)))

    x = x.astype(jnp.bfloat16)
    w = w.astype(jnp.bfloat16)
    b = b.astype(jnp.float32)

    tn = _pick_tile(Np, (2048, 1024, 512, 256, 128))
    tm = M if M <= 512 else _pick_tile(M, (512, 256, 128))
    grid = (M // tm, Np // tn)

    cost = pl.CostEstimate(
        flops=2 * M * K * Np + M * Np,
        transcendentals=0,
        bytes_accessed=2 * (M * K + K * Np) + 4 * Np
        + M * Np * jnp.dtype(out_dtype).itemsize,
    )
    out = pl.pallas_call(
        _matmul_bias_kernel,
        out_shape=jax.ShapeDtypeStruct((M, Np), out_dtype),
        grid_spec=pltpu.PrefetchScalarGridSpec(
            num_scalar_prefetch=0,
            grid=grid,
            in_specs=[
                pl.BlockSpec((tm, K), lambda i, j: (i, 0)),    # activation tile
                pl.BlockSpec((K, tn), lambda i, j: (0, j)),    # weight tile
                pl.BlockSpec((1, tn), lambda i, j: (0, j)),    # bias tile
            ],
            out_specs=pl.BlockSpec((tm, tn), lambda i, j: (i, j)),
        ),
        compiler_params=pltpu.CompilerParams(
            dimension_semantics=("parallel", "parallel"),
            vmem_limit_bytes=64 * 1024 * 1024,
        ),
        cost_estimate=cost,
    )(x, w, b)
    return out[:, :N] if Np != N else out


# ----------------------------------------------------------------------------
# LSTM recurrence: grid = (batch tiles, T); one timestep of xg streamed per
# grid step, h/c carried in VMEM scratch, output written batch-major.
# ----------------------------------------------------------------------------
def _lstm_step_kernel(xg_ref, whh_ref, h_out_ref, h_sc, c_sc, *, hidden_size):
    H = hidden_size
    t = pl.program_id(1)

    @pl.when(t == 0)
    def _():
        h_sc[...] = jnp.zeros_like(h_sc)
        c_sc[...] = jnp.zeros_like(c_sc)

    h = h_sc[...]
    c = c_sc[...]
    # Only the recurrent half of the gates stays on the serial path.
    gates = xg_ref[0].astype(jnp.float32) + jnp.dot(
        h.astype(jnp.bfloat16), whh_ref[...], preferred_element_type=jnp.float32)
    # H is padded to a multiple of 128 -> lane-aligned, relayout-free slices.
    i_g = jax.nn.sigmoid(gates[:, 0 * H:1 * H])
    f_g = jax.nn.sigmoid(gates[:, 1 * H:2 * H])
    g_g = jnp.tanh(gates[:, 2 * H:3 * H])
    o_g = jax.nn.sigmoid(gates[:, 3 * H:4 * H])
    c = f_g * c + i_g * g_g
    h = o_g * jnp.tanh(c)
    h_sc[...] = h
    c_sc[...] = c
    # Batch-major output block (tb, T, H) stays resident across the T axis.
    h_out_ref[:, pl.ds(t, 1), :] = h[:, None, :]


def _lstm_recurrence(xg, whh_bf16, *, hidden_size):
    """xg: (T, B, 4H) bf16 precomputed input gates -> hidden states (B, T, H) f32."""
    T, B, G = xg.shape
    H = hidden_size

    # Split the batch across the grid only when each half still feeds a
    # 256-wide MXU (useful on 2-TC parts); otherwise it just shrinks the
    # per-step matmul and adds grid-step overhead on single-TC chips.
    tb = B // 2 if (B >= 512 and B % 16 == 0) else B
    grid = (B // tb, T)

    kernel = functools.partial(_lstm_step_kernel, hidden_size=H)

    cost = pl.CostEstimate(
        flops=2 * T * B * H * G + 12 * T * B * H,
        transcendentals=5 * T * B * H,
        bytes_accessed=2 * (T * B * G + H * G) + 4 * T * B * H,
    )
    return pl.pallas_call(
        kernel,
        out_shape=jax.ShapeDtypeStruct((B, T, H), jnp.float32),
        grid_spec=pltpu.PrefetchScalarGridSpec(
            num_scalar_prefetch=0,
            grid=grid,
            in_specs=[
                # One timestep of precomputed input gates per grid step
                # (pipelined DMA hides behind the serial step).
                pl.BlockSpec((1, tb, G), lambda b, t: (t, b, 0)),
                # W_hh^T: constant block index -> stays resident in VMEM.
                pl.BlockSpec((H, G), lambda b, t: (0, 0)),
            ],
            out_specs=pl.BlockSpec((tb, T, H), lambda b, t: (b, 0, 0)),
            scratch_shapes=[
                pltpu.VMEM((tb, H), jnp.float32),   # h carry (f32)
                pltpu.VMEM((tb, H), jnp.float32),   # c carry (f32)
            ],
        ),
        compiler_params=pltpu.CompilerParams(
            dimension_semantics=("parallel", "arbitrary"),
            vmem_limit_bytes=32 * 1024 * 1024,
        ),
        cost_estimate=cost,
    )(xg, whh_bf16)


# ----------------------------------------------------------------------------
# Host-side padding helpers (exact-zero padding -> semantics unchanged).
# ----------------------------------------------------------------------------
def _pad_gate_blocks(a, H, Hp):
    """Zero-pad each of the four [i|f|g|o] gate blocks in the trailing 4H dim."""
    if Hp == H:
        return a
    lead = a.shape[:-1]
    a4 = a.reshape(lead + (4, H))
    pad = [(0, 0)] * (len(lead) + 1) + [(0, Hp - H)]
    return jnp.pad(a4, pad).reshape(lead + (4 * Hp,))


# ----------------------------------------------------------------------------
# Full forward pass (eval mode)
# ----------------------------------------------------------------------------
def decoder_rnn_forward(features, captions, params):
    """JAX/Pallas equivalent of DecoderRNN.forward (eval mode)."""
    embed_tbl = params["embed"]          # (V, E)
    wih_t = params["w_ih_t"]             # (E, 4H)
    whh_t = params["w_hh_t"]             # (H, 4H)
    bias = params["b_ih"] + params["b_hh"]   # fold the two LSTM biases (1, 4H)
    wl_t = params["w_lin_t"]             # (H, V)
    bl = params["b_lin"]                 # (1, V)

    H = whh_t.shape[0]
    V = wl_t.shape[1]
    Hp = ((H + 127) // 128) * 128        # lane-aligned hidden size

    # Exact-zero pads: padded gate pre-activations are exactly 0, so the
    # padded c/h channels stay exactly 0 and contribute nothing downstream.
    wih_p = _pad_gate_blocks(wih_t, H, Hp)                                  # (E, 4Hp)
    whh_p = _pad_gate_blocks(jnp.pad(whh_t, ((0, Hp - H), (0, 0))), H, Hp)  # (Hp, 4Hp)
    bias_p = _pad_gate_blocks(bias, H, Hp)                                  # (1, 4Hp)
    wl_p = jnp.pad(wl_t, ((0, Hp - H), (0, 0)))                             # (Hp, V)

    # --- glue: embedding lookup + prepend image features ---
    emb = jnp.take(embed_tbl, captions[:, :-1], axis=0)          # (B, L-1, E)
    x = jnp.concatenate([features[:, None, :], emb], axis=1)     # (B, T, E)
    B, T, E = x.shape

    # (1) Input-gate precompute for ALL timesteps as one bf16 GEMM (f32 acc),
    #     stored in bf16 to halve the HBM bytes the recurrence streams.
    x_tm = jnp.transpose(x, (1, 0, 2))                           # (T, B, E) small
    xg = _matmul_bias(x_tm.reshape(T * B, E), wih_p, bias_p,
                      out_dtype=jnp.bfloat16)                    # (T*B, 4Hp)
    xg = xg.reshape(T, B, 4 * Hp)

    # (2) Sequential recurrence: one pallas_call, one timestep per grid step,
    #     batch-major output -> no transpose before the projection.
    h_states = _lstm_recurrence(xg, whh_p.astype(jnp.bfloat16),
                                hidden_size=Hp)                  # (B, T, Hp)

    # TODO(synk): training-mode dropout (p=0.3) not implemented (eval=identity).

    # (3) Hoisted output projection (vocab dim padded to 128 inside).
    logits = _matmul_bias(h_states.reshape(B * T, Hp), wl_p, bl,
                          out_dtype=jnp.float32)                 # (B*T, V)
    return logits.reshape(B, T, V)


def decoder_rnn_forward_ref(features, captions, params):
    """Pure-JAX reference with matching numerics (bf16 MXU operands, f32 acc)."""
    embed_tbl = params["embed"]
    wih_t, whh_t = params["w_ih_t"], params["w_hh_t"]
    bias = params["b_ih"] + params["b_hh"]
    wl_t, bl = params["w_lin_t"], params["b_lin"]

    def mm(a, b):
        return jax.lax.dot(a.astype(jnp.bfloat16), b.astype(jnp.bfloat16),
                           preferred_element_type=jnp.float32)

    emb = jnp.take(embed_tbl, captions[:, :-1], axis=0)
    x = jnp.concatenate([features[:, None, :], emb], axis=1)     # (B, T, E)
    x_tm = jnp.transpose(x, (1, 0, 2))                           # (T, B, E)
    T, B, E = x_tm.shape
    H = whh_t.shape[0]

    xg = (mm(x_tm.reshape(T * B, E), wih_t) + bias).astype(jnp.bfloat16)
    xg = xg.reshape(T, B, 4 * H)

    def step(carry, xg_t):
        h, c = carry
        gates = xg_t.astype(jnp.float32) + mm(h, whh_t)
        i_g = jax.nn.sigmoid(gates[:, 0 * H:1 * H])
        f_g = jax.nn.sigmoid(gates[:, 1 * H:2 * H])
        g_g = jnp.tanh(gates[:, 2 * H:3 * H])
        o_g = jax.nn.sigmoid(gates[:, 3 * H:4 * H])
        c = f_g * c + i_g * g_g
        h = o_g * jnp.tanh(c)
        return (h, c), h

    h0 = jnp.zeros((B, H), jnp.float32)
    c0 = jnp.zeros((B, H), jnp.float32)
    _, hs = jax.lax.scan(step, (h0, c0), xg)                     # (T, B, H)
    hs_bm = jnp.transpose(hs, (1, 0, 2)).reshape(B * T, H)
    logits = (mm(hs_bm, wl_t) + bl).reshape(B, T, -1)
    return logits


def init_params(key, embed_size, hidden_size, vocab_size):
    ks = jax.random.split(key, 7)
    E, H, V = embed_size, hidden_size, vocab_size
    s = 1.0 / jnp.sqrt(jnp.float32(H))
    u = lambda k, shape: jax.random.uniform(k, shape, jnp.float32, -s, s)
    return {
        "embed":   jax.random.normal(ks[0], (V, E), jnp.float32),
        # PyTorch stores W_ih:(4H,E), W_hh:(4H,H); we keep the transposes.
        "w_ih_t":  u(ks[1], (E, 4 * H)),
        "w_hh_t":  u(ks[2], (H, 4 * H)),
        "b_ih":    u(ks[3], (1, 4 * H)),
        "b_hh":    u(ks[4], (1, 4 * H)),
        "w_lin_t": u(ks[5], (H, V)),
        "b_lin":   u(ks[6], (1, V)),
    }


if __name__ == "__main__":
    B = 2            # batch
    E = 32           # embed_size
    H = 32           # hidden_size
    V = 128          # vocab_size
    L = 8            # caption length -> LSTM sequence length T = L

    key = jax.random.PRNGKey(0)
    k_par, k_feat, k_cap = jax.random.split(key, 3)

    params = init_params(k_par, E, H, V)
    features = jax.random.normal(k_feat, (B, E), jnp.float32)
    captions = jax.random.randint(k_cap, (B, L), 0, V, jnp.int32)

    out = decoder_rnn_forward(features, captions, params)
    out = jax.block_until_ready(out)

    ref = decoder_rnn_forward_ref(features, captions, params)
    assert out.shape == (B, L, V), out.shape
    # bf16 MXU operands on both paths -> moderate tolerance.
    assert jnp.allclose(out, ref, atol=1e-2, rtol=1e-2), \
        float(jnp.max(jnp.abs(out - ref)))

    print("KERNEL_OK")
</pallas_src>

<mosaic_0001>
module attributes {stable_mosaic.version = 11 : i64} {
  func.func @_matmul_bias_kernel(%arg0: i32, %arg1: i32, %arg2: memref<16x32xbf16, #tpu.memory_space<vmem>>, %arg3: memref<32x512xbf16, #tpu.memory_space<vmem>>, %arg4: memref<1x512xf32, #tpu.memory_space<vmem>>, %arg5: memref<16x512xbf16, #tpu.memory_space<vmem>>) attributes {dimension_semantics = [#tpu.dimension_semantics<parallel>, #tpu.dimension_semantics<parallel>], iteration_bounds = array<i64: 1, 1>, scalar_prefetch = 0 : i64, scratch_operands = 0 : i64, tpu.core_type = #tpu.core_type<tc>, window_params = [{transform_indices = @transform_0, window_bounds = array<i64: 16, 32>}, {transform_indices = @transform_1, window_bounds = array<i64: 32, 512>}, {transform_indices = @transform_2, window_bounds = array<i64: 1, 512>}, {transform_indices = @transform_3, window_bounds = array<i64: 16, 512>}]} {
    %c0 = arith.constant 0 : index
    %c0_0 = arith.constant 0 : index
    %0 = vector.load %arg2[%c0, %c0_0] : memref<16x32xbf16, #tpu.memory_space<vmem>>, vector<16x32xbf16>
    %c0_1 = arith.constant 0 : index
    %c0_2 = arith.constant 0 : index
    %1 = vector.load %arg3[%c0_1, %c0_2] : memref<32x512xbf16, #tpu.memory_space<vmem>>, vector<32x512xbf16>
    %cst = arith.constant dense<0.000000e+00> : vector<16x512xf32>
    %2 = tpu.matmul %0, %1, %cst {dimension_numbers = #tpu.dot_dimension_numbers<[1], [0], [0], [1], [0, 0, 1, 1], [], []>} : vector<16x32xbf16>, vector<32x512xbf16>, vector<16x512xf32> -> vector<16x512xf32>
    %c0_3 = arith.constant 0 : index
    %c0_4 = arith.constant 0 : index
    %3 = vector.load %arg4[%c0_3, %c0_4] : memref<1x512xf32, #tpu.memory_space<vmem>>, vector<1x512xf32>
    %4 = vector.broadcast %3 : vector<1x512xf32> to vector<16x512xf32>
    %5 = arith.addf %2, %4 : vector<16x512xf32>
    %6 = arith.truncf %5 : vector<16x512xf32> to vector<16x512xbf16>
    %c0_5 = arith.constant 0 : index
    %c0_6 = arith.constant 0 : index
    %7 = vector.load %arg5[%c0_5, %c0_6] : memref<16x512xbf16, #tpu.memory_space<vmem>>, vector<16x512xbf16>
    tpu.vector_store %arg5[%c0_5, %c0_6], %6 {strides = array<i32>} : memref<16x512xbf16, #tpu.memory_space<vmem>>, vector<16x512xbf16>,
    return
  }
  func.func @transform_0(%arg0: i32, %arg1: i32) -> (i32, i32) {
    %c0_i32 = arith.constant 0 : i32
    %c0_i32_0 = arith.constant 0 : i32
    return %arg0, %c0_i32 : i32, i32
  }
  func.func @transform_1(%arg0: i32, %arg1: i32) -> (i32, i32) {
    %c0_i32 = arith.constant 0 : i32
    %c0_i32_0 = arith.constant 0 : i32
    return %c0_i32, %arg1 : i32, i32
  }
  func.func @transform_2(%arg0: i32, %arg1: i32) -> (i32, i32) {
    %c0_i32 = arith.constant 0 : i32
    %c0_i32_0 = arith.constant 0 : i32
    return %c0_i32, %arg1 : i32, i32
  }
  func.func @transform_3(%arg0: i32, %arg1: i32) -> (i32, i32) {
    %c0_i32 = arith.constant 0 : i32
    return %arg0, %arg1 : i32, i32
  }
}

</mosaic_0001>

<bundles_post_ra>
// kernel: tpu_custom_call.1
= control target key start
LH: loop header
LB: loop body
LE: loop exit
PB: predicated region body
PF: predicated region fallthrough
CT: control target
= control target key end

     0   :  { %8 = vsyncpa [#allocation3], 0  ;;  %s442_s0 = inlined_call_operand.hbm [shape: bf16[16,32], index: 0, kind: input, shape index: {}]   ;;  %s443_s1 = inlined_call_operand.hbm [shape: bf16[32,512], index: 1, kind: input, shape index: {}]   ;;  %s444_s2 = inlined_call_operand.hbm [shape: f32[1,512], index: 2, kind: input, shape index: {}]   ;;  %s445_s3 = inlined_call_operand.hbm [shape: bf16[16,512], index: 3, kind: output, shape index: {}]  }
   0x1   :  { %9 = vsyncpa [#allocation6], 0 }
   0x2   :  { %10 = vsyncpa [#allocation4], 0  ;;  %s395_s12 = smov [#allocation5]  }
   0x3   :  { %s28_s13 = sshll.u32 %s395_s12, 4  ;;  %s29_s13 = int_to_ptr.vmem [resolvable:$true] %s28_s13 }
   0x4   :  { %s317_s14 = scalar_lea.vmem %s29_s13, 1024  ;;  %p322_p1 = scmp.lt.s32.totalorder %s29_s13, %s29_s13 }
   0x5   :  { %p318_p0 = scmp.ne.s32.totalorder %s29_s13, %s317_s14  ;;  %p323_p2 = scmp.lt.s32.totalorder %s317_s14, %s317_s14 }
   0x7   :  { %p324_p3 = por %p323_p2, %p322_p1 }
   0x9   :  { %p325_p4 = pnand %p324_p3, %p318_p0 }
   0xb   :  { %328 = shalt.err (!%p325_p4)
}
   0xc   :  { %s396_s15 = smov 256   ;;  %s397_s16 = smov 16  }
   0xd   :  { %34 = dma.hbm_to_vmem [thread:$0]  %s443_s1, 1024, %s29_s13, [#allocation6], %s396_s15, %s396_s15, %s397_s16  }
   0xe   :  { %s398_s19 = smov [#allocation2]  }
   0xf   :  { %s16_s20 = sshll.u32 %s398_s19, 4  ;;  %s17_s20 = int_to_ptr.vmem [resolvable:$true] %s16_s20 }
  0x10   :  { %s337_s21 = scalar_lea.vmem %s17_s20, 128  ;;  %p342_p6 = scmp.lt.s32.totalorder %s17_s20, %s17_s20 }
  0x11   :  { %p338_p5 = scmp.ne.s32.totalorder %s17_s20, %s337_s21  ;;  %p343_p7 = scmp.lt.s32.totalorder %s337_s21, %s337_s21 }
  0x13   :  { %p344_p8 = por %p343_p7, %p342_p6 }
  0x15   :  { %p345_p9 = pnand %p344_p8, %p338_p5 }
  0x17   :  { %348 = shalt.err (!%p345_p9)
}
  0x18   :  { %s399_s22 = smov 64   ;;  %s400_s23 = smov 4  }
  0x19   :  { %22 = dma.hbm_to_vmem [thread:$0]  %s442_s0, 128, %s17_s20, [#allocation3], %s399_s22, %s399_s22, %s400_s23  }
  0x1a   :  { %s401_s26 = smov [#allocation7]  }
  0x1b   :  { %s41_s27 = sshll.u32 %s401_s26, 4  ;;  %s42_s27 = int_to_ptr.vmem [resolvable:$true] %s41_s27 }
  0x1c   :  { %s357_s1 = scalar_lea.vmem %s42_s27, 64  ;;  %p362_p11 = scmp.lt.s32.totalorder %s42_s27, %s42_s27 }
  0x1d   :  { %p358_p10 = scmp.ne.s32.totalorder %s42_s27, %s357_s1  ;;  %p363_p12 = scmp.lt.s32.totalorder %s357_s1, %s357_s1 }
  0x1f   :  { %p364_p13 = por %p363_p12, %p362_p11 }
  0x21   :  { %p365_p0 = pnand %p364_p13, %p358_p10 }
  0x23   :  { %368 = shalt.err (!%p365_p0)
}
  0x24   :  { %44 = dma.hbm_to_vmem [thread:$0]  %s444_s2, 64, %s42_s27, [#allocation6]  }
  0x25   :  { %389 = dma.done.wait [#allocation3], 128  }
  0x26   :  { %390 = vsyncadd [#allocation3], 4294967168 }
  0x27   :  { %391 = dma.done.wait [#allocation6], 1088  }
  0x28   :  { %392 = vsyncadd [#allocation6], 4294966208  ;;  %v402_v0 = vmov 0   ;;  %v296_v1 = vld [vmem:[#allocation5 + $0x24] ss:$16 sps:$4 sm:$0xff]   ;;  %v308_v9 = vld [vmem:[#allocation2] sm:$0xff]   ;;  %v67_v10 = vlaneseq }
  0x29   :  { %168 = vmatprep.mubr.bf16.mxu0 %v402_v0  ;;  %211 = vmatprep.mubr.bf16.mxu1 %v402_v0  ;;  %v298_v2 = vld [vmem:[#allocation5 + $0x2c] ss:$16 sps:$4 sm:$0xff]   ;;  %v300_v3 = vld [vmem:[#allocation5 + $0x20] ss:$16 sps:$4 sm:$0xff]   ;;  %v301_v4 = vld [vmem:[#allocation5 + $0x28] ss:$16 sps:$4 sm:$0xff]  }
  0x2a   :  { %148 = vmatprep.subr.bf16.mxu0 %v296_v1  ;;  %191 = vmatprep.subr.bf16.mxu1 %v298_v2  ;;  %v302_v5 = vld [vmem:[#allocation5 + $0x4] ss:$16 sps:$4 sm:$0xff]   ;;  %v304_v6 = vld [vmem:[#allocation5 + $0xc] ss:$16 sps:$4 sm:$0xff]   ;;  %v306_v7 = vld [vmem:[#allocation5] ss:$16 sps:$4 sm:$0xff]  }
  0x2b   :  { %149 = vmatpush1.bf16.msra.mxu0 %v300_v3  ;;  %192 = vmatpush1.bf16.msra.mxu1 %v301_v4  ;;  %v307_v8 = vld [vmem:[#allocation5 + $0x8] ss:$16 sps:$4 sm:$0xff]   ;;  %vm132_vm0 = vcmask 261120   ;;  %v68_v11 = vshrl.u32 %v67_v10, 7  ;;  %v65_v16 = vld [vmem:[#allocation7] sm:$0xf] }
  0x2c   :  { %150 = vmatprep.subr.bf16.mxu0 %v302_v5  ;;  %193 = vmatprep.subr.bf16.mxu1 %v304_v6  ;;  %s403_s0 = smov [#allocation8]  }
  0x2d   :  { %v69_v12 = vsub.s32 0, %v68_v11  ;;  %v77_v13 = vsub.s32 2, %v68_v11  ;;  %v73_v14 = vsub.s32 1, %v68_v11  ;;  %v81_v15 = vsub.s32 3, %v68_v11  ;;  %s255_s2 = sshll.u32 %s403_s0, 4  ;;  %s256_s2 = int_to_ptr.vmem [resolvable:$true] %s255_s2 }
  0x2e   :  { %s369_s30 = scalar_lea.vmem %s256_s2, 512  ;;  %p374_p2 = scmp.lt.s32.totalorder %s256_s2, %s256_s2 }
  0x2f   :  { %151 = vmatpush1.bf16.msra.mxu0 %v306_v7  ;;  %194 = vmatpush1.bf16.msra.mxu1 %v307_v8  ;;  %v70_v17 = vrot.slane %v65_v16, %v69_v12  ;;  %v78_v18 = vrot.slane %v65_v16, %v77_v13  ;;  %v74_v19 = vrot.slane %v65_v16, %v73_v14  ;;  %p370_p1 = scmp.ne.s32.totalorder %s256_s2, %s369_s30  ;;  %p375_p3 = scmp.lt.s32.totalorder %s369_s30, %s369_s30 }
  0x30   :  { %v82_v20 = vrot.slane %v65_v16, %v81_v15 }
  0x31   :  { %p376_p4 = por %p375_p3, %p374_p2 }
  0x32   :  { %277 = vmatmul.mubr.msk.bf16.vlgmr.msra.gmra.mxu0 %vm132_vm0, %v308_v9  ;;  %278 = vmatmul.mubr.msk.bf16.vlgmr.msra.gmra.mxu1 %vm132_vm0, %v308_v9 }
  0x33   :  { %p377_p5 = pnand %p376_p4, %p370_p1 }
  0xf2   :  { %v170_v21 = vpop.f32.mrf.mxu0  ;;  %v213_v22 = vpop.f32.mrf.mxu1 }
  0xf3   :  { %v171_v25 = vadd.f32 %v170_v21, %v70_v17  ;;  %v214_v26 = vadd.f32 %v213_v22, %v78_v18 }
  0xf4   :  { %v172_v23 = vpop.f32.mrf.mxu0  ;;  %v215_v24 = vpop.f32.mrf.mxu1 }
  0xf5   :  { %v173_v27 = vadd.f32 %v172_v23, %v74_v19  ;;  %v216_v28 = vadd.f32 %v215_v24, %v82_v20 }
  0xf6   :  { %v174_v29 = vpop.f32.mrf.mxu0  ;;  %v217_v30 = vpop.f32.mrf.mxu1 }
  0xf7   :  { %v283_v31 = vpack.c.bf16 %v173_v27, %v171_v25  ;;  %v284_v32 = vpack.c.bf16 %v216_v28, %v214_v26  ;;  %v175_v35 = vadd.f32 %v174_v29, %v70_v17  ;;  %v218_v36 = vadd.f32 %v217_v30, %v78_v18 }
  0xf8   :  { %v176_v33 = vpop.f32.mrf.mxu0  ;;  %v219_v34 = vpop.f32.mrf.mxu1 }
  0xf9   :  { %246 = vst [vmem:[#allocation8] sm:$0xff] %v283_v31  ;;  %247 = vst [vmem:[#allocation8 + $0x8] sm:$0xff] %v284_v32  ;;  %v177_v37 = vadd.f32 %v176_v33, %v74_v19  ;;  %v220_v38 = vadd.f32 %v219_v34, %v82_v20 }
  0xfb   :  { %v285_v39 = vpack.c.bf16 %v177_v37, %v175_v35  ;;  %v286_v40 = vpack.c.bf16 %v220_v38, %v218_v36 }
  0xfd   :  { %248 = vst [vmem:[#allocation8 + $0x10] sm:$0xff] %v285_v39  ;;  %249 = vst [vmem:[#allocation8 + $0x18] sm:$0xff] %v286_v40 }
  0xfe   :  { %380 = shalt.err (!%p377_p5)
}
  0xff   :  { %261 = dma.vmem_to_hbm [thread:$0]  %s256_s2, 512, %s445_s3, [#allocation4], %s396_s15, %s396_s15, %s397_s16  }
 0x100   :  { %393 = dma.done.wait [#allocation4], 512  }
 0x101   :  { %394 = vsyncadd [#allocation4], 4294966784 }
 0x102   :  { %265 = vsyncpa [#allocation3], 1 }
 0x103   :  { %266 = vsyncpa [#allocation6], 1 }
 0x104   :  { %267 = vsyncpa [#allocation4], 1 }

</bundles_post_ra>
